<compile_context>
chip_gen: v5e
topology: v5e:2x2
jax: 0.10.0
libtpu: 0.0.40
codegen_flags: <defaults>
</compile_context>

<pallas_src>
import jax
import jax.numpy as jnp
from jax.experimental import pallas as pl
from jax.experimental.pallas import tpu as pltpu


def _round_up(x, m):
    return ((x + m - 1) // m) * m


def _estimate_vmem_bytes(tb, ts, dx, dy, dims, act_itemsize):
    """Rough VMEM budget, padded to the TPU (sublane, 128-lane) layout."""

    def padded(rows, cols, itemsize):
        sub = max(1, 32 // itemsize)          # 8 rows for f32, 16 for bf16
        return _round_up(max(rows, 1), sub) * _round_up(max(cols, 1), 128) * itemsize

    # Double-buffered activation input tiles (3-D blocks pad the last two dims).
    act = 2 * tb * (padded(ts, dx, act_itemsize) + padded(ts, dy, act_itemsize))
    # Weights (single-buffered) + f32 biases.
    wts = 0
    for i in range(len(dims) - 1):
        wts += padded(dims[i], dims[i + 1], act_itemsize)
        wts += padded(1, dims[i + 1], 4)
    # ~Two live f32 intermediates of the widest layer inside the body.
    inter = 2 * padded(tb * ts, max(dims[1:]), 4)
    # Revisited f32 output block (double-buffered).
    outb = 2 * padded(tb, dims[-1], 4)
    return act + wts + inter + outb


def _make_encoder_kernel(num_layers, set_size, ts, ns_inner, need_mask):
    """MLP(concat(x, y)) with the set-mean fused into the grid reduction.

    refs layout: x, y, W0_x, W0_y, b0, (W_l, b_l) for l>=1, out.
    The output block [1, tb, d_out] is revisited across the innermost
    (set-reduction) grid axis and used directly as the f32 accumulator.
    """

    def kernel(x_ref, y_ref, *refs):
        n_w = 2 * num_layers + 1
        w_refs = refs[:n_w]
        out_ref = refs[n_w]

        c = pl.program_id(0)      # set-split index (parallel; feeds 2nd TC on v7x)
        j = pl.program_id(2)      # set-tile index within the split (reduction)

        @pl.when(j == 0)
        def _init():
            out_ref[...] = jnp.zeros_like(out_ref)

        tb, tile_s, dx = x_ref.shape
        dy = y_ref.shape[-1]

        x = x_ref[...].reshape(tb * tile_s, dx)
        y = y_ref[...].reshape(tb * tile_s, dy)

        # Layer 0 with a split first weight: no concat ever materializes.
        w0x = w_refs[0][...]
        w0y = w_refs[1][...]
        b0 = w_refs[2][...]
        h = (jnp.dot(x, w0x, preferred_element_type=jnp.float32)
             + jnp.dot(y, w0y, preferred_element_type=jnp.float32)
             + b0)
        if num_layers > 1:
            h = jnp.maximum(h, 0.0)

        # Remaining layers (f32 accumulation, inputs cast to the weight dtype).
        for l in range(1, num_layers):
            w = w_refs[2 * l + 1][...]
            bvec = w_refs[2 * l + 2][...]
            h_in = h.astype(w.dtype) if w.dtype != h.dtype else h
            h = jnp.dot(h_in, w, preferred_element_type=jnp.float32) + bvec
            if l < num_layers - 1:
                h = jnp.maximum(h, 0.0)

        d_out = h.shape[-1]
        h = h.reshape(tb, tile_s, d_out)

        if need_mask:
            # Zero rows past the true set size: covers both the set tail and
            # any duplicated (clamped) tiles produced by the set-split axis.
            jj = c * ns_inner + j          # unclamped logical set-tile index
            row_ids = jj * ts + jax.lax.broadcasted_iota(
                jnp.int32, (1, tile_s, 1), 1)
            h = jnp.where(row_ids < set_size, h, 0.0)

        out_ref[...] += jnp.sum(h, axis=1)[None, :, :]

        @pl.when(j == pl.num_programs(2) - 1)
        def _finalize():
            out_ref[...] = out_ref[...] * (1.0 / set_size)

    return kernel


def encoder_forward(context_x, context_y, weights, biases, *,
                    compute_dtype=jnp.bfloat16,
                    max_tb=16, max_ts=512,
                    vmem_target_bytes=24 * 1024 * 1024,
                    num_set_splits=None):
    """Pallas Encoder forward.

    context_x: [B, S, Dx], context_y: [B, S, Dy]
    weights[i]: [dims[i], dims[i+1]] (already transposed vs. torch Linear)
    biases[i]:  [dims[i+1]]
    Returns representation [B, dims[-1]] in float32.
    """
    b, s, dx = context_x.shape
    dy = context_y.shape[-1]
    num_layers = len(weights)
    d_out = weights[-1].shape[1]
    dims = [dx + dy] + [w.shape[1] for w in weights]
    assert weights[0].shape[0] == dx + dy

    act_itemsize = jnp.dtype(compute_dtype).itemsize

    # ---- tile selection with an explicit VMEM budget ----
    tb = b if b <= max_tb else max(8, (max_tb // 8) * 8)
    ts = s if s <= max_ts else max(8, (max_ts // 8) * 8)
    while ts > 8 and _estimate_vmem_bytes(tb, ts, dx, dy, dims,
                                          act_itemsize) > vmem_target_bytes:
        nts = ts // 2
        if nts < s:                      # partial block -> must be a multiple of 8
            nts = max(8, (nts // 8) * 8)
        ts = nts

    nb = pl.cdiv(b, tb)
    ns = pl.cdiv(s, ts)

    # Leading parallel axis splitting the set reduction into partial sums so
    # both v7x TensorCores get work when the batch axis has only one tile.
    if num_set_splits is None:
        nc = 2 if (nb == 1 and ns >= 2) else 1
    else:
        nc = max(1, min(int(num_set_splits), ns))
    ns_inner = pl.cdiv(ns, nc)

    need_mask = (s % ts != 0) or (nc * ns_inner != ns)

    # ---- operands: low-precision activations/weights, f32 biases ----
    cx = context_x.astype(compute_dtype)
    cy = context_y.astype(compute_dtype)
    w0 = weights[0].astype(compute_dtype)
    w0x, w0y = w0[:dx], w0[dx:]
    ws = [w.astype(compute_dtype) for w in weights[1:]]
    b2d = [jnp.reshape(bb, (1, -1)).astype(jnp.float32) for bb in biases]

    kernel = _make_encoder_kernel(num_layers, s, ts, ns_inner, need_mask)

    def xy_map(c, i, j):
        # Clamp so the DMA never reads a block that starts out of bounds; the
        # duplicated tile (if any) is fully masked inside the kernel.
        return (i, jnp.minimum(c * ns_inner + j, ns - 1), 0)

    est = _estimate_vmem_bytes(tb, ts, dx, dy, dims, act_itemsize)
    vmem_limit = int(min(40 * 2 ** 20,
                         max(32 * 2 ** 20, int(est * 1.25) + 4 * 2 ** 20)))

    flops = 2 * b * s * sum(dims[i] * dims[i + 1] for i in range(num_layers))
    bytes_accessed = ((cx.size + cy.size) * act_itemsize
                      + (w0.size + sum(w.size for w in ws)) * act_itemsize
                      + sum(bb.size for bb in b2d) * 4
                      + nc * b * d_out * 4)
    cost = pl.CostEstimate(flops=int(flops), transcendentals=0,
                           bytes_accessed=int(bytes_accessed))

    args = [cx, cy, w0x, w0y, b2d[0]]
    const_shapes = [w0x.shape, w0y.shape, b2d[0].shape]
    for l in range(1, num_layers):
        args.append(ws[l - 1])
        args.append(b2d[l])
        const_shapes.append(ws[l - 1].shape)
        const_shapes.append(b2d[l].shape)

    def _run(single_buffer_weights):
        const_map = lambda c, i, j: (0, 0)

        def wspec(shape):
            if single_buffer_weights:
                # Constant index_map -> one VMEM buffer is enough; frees budget
                # for bigger activation tiles (matters most on v7x, 64 MiB).
                return pl.BlockSpec(shape, const_map, pipeline_mode=pl.Buffered(1))
            return pl.BlockSpec(shape, const_map)

        in_specs = [
            pl.BlockSpec((tb, ts, dx), xy_map),
            pl.BlockSpec((tb, ts, dy), xy_map),
        ] + [wspec(shape) for shape in const_shapes]

        out_specs = pl.BlockSpec((1, tb, d_out), lambda c, i, j: (c, i, 0))
        out_shape = jax.ShapeDtypeStruct((nc, b, d_out), jnp.float32)

        return pl.pallas_call(
            kernel,
            out_shape=out_shape,
            grid_spec=pltpu.PrefetchScalarGridSpec(
                num_scalar_prefetch=0,
                grid=(nc, nb, ns_inner),
                in_specs=in_specs,
                out_specs=out_specs,
            ),
            compiler_params=pltpu.CompilerParams(
                dimension_semantics=("parallel", "parallel", "arbitrary"),
                vmem_limit_bytes=vmem_limit),
            cost_estimate=cost,
        )(*args)

    try:
        partial_means = _run(single_buffer_weights=True)
    except Exception:  # fall back if pipeline_mode=Buffered(1) is unsupported
        partial_means = _run(single_buffer_weights=False)

    # Each split already carries the 1/S factor -> summing gives the set mean.
    return jnp.sum(partial_means, axis=0)


def init_encoder_params(key, dimensions):
    """Deterministic synthetic weights for MLP(dimensions) (torch-style init)."""
    weights, biases = [], []
    for i in range(len(dimensions) - 1):
        key, kw, kb = jax.random.split(key, 3)
        fan_in = dimensions[i]
        bound = 1.0 / (fan_in ** 0.5)
        w = jax.random.uniform(
            kw, (dimensions[i], dimensions[i + 1]), jnp.float32, -bound, bound)
        bb = jax.random.uniform(
            kb, (dimensions[i + 1],), jnp.float32, -bound, bound)
        weights.append(w)
        biases.append(bb)
    return weights, biases


def _reference_forward(context_x, context_y, weights, biases):
    """Pure-JAX reference for correctness checking."""
    h = jnp.concatenate((context_x, context_y), axis=-1)
    b, s, _ = h.shape
    h = h.reshape(b * s, -1)
    for i, (w, bb) in enumerate(zip(weights, biases)):
        h = h @ w + bb
        if i < len(weights) - 1:
            h = jnp.maximum(h, 0.0)
    h = h.reshape(b, s, -1)
    return jnp.mean(h, axis=1)


if __name__ == "__main__":
    def _run_case(key, B, S, dx, dy, dims, name):
        k1, k2, kp = jax.random.split(key, 3)
        cx = jax.random.normal(k1, (B, S, dx), jnp.float32)
        cy = jax.random.normal(k2, (B, S, dy), jnp.float32)
        weights, biases = init_encoder_params(kp, dims)
        ref = _reference_forward(cx, cy, weights, biases)

        # Exact-precision path (f32 everywhere): tight tolerance.
        out_f32 = encoder_forward(cx, cy, weights, biases,
                                  compute_dtype=jnp.float32)
        jax.block_until_ready(out_f32)
        assert out_f32.shape == (B, dims[-1]), name
        assert jnp.allclose(out_f32, ref, atol=1e-4, rtol=1e-4), name

        # Default bf16 activation/weight path: looser tolerance.
        out_bf16 = encoder_forward(cx, cy, weights, biases)
        jax.block_until_ready(out_bf16)
        assert out_bf16.shape == (B, dims[-1]), name
        assert jnp.allclose(out_bf16, ref, atol=5e-2, rtol=5e-2), name

    key = jax.random.PRNGKey(0)
    k1, k2, k3 = jax.random.split(key, 3)

    # Small spec-consistent shape (B=2, S=8, hidden=32).
    _run_case(k1, B=2, S=8, dx=8, dy=8, dims=[16, 32, 32, 32], name="small")
    # Exercises the set-tile tail mask and the 2-way set-split (v7x dual-TC) path.
    _run_case(k2, B=4, S=520, dx=8, dy=8, dims=[16, 32, 32, 16], name="set_tail")
    # Exercises a batch-tile tail (B % tb != 0).
    _run_case(k3, B=20, S=64, dx=8, dy=8, dims=[16, 32, 32, 32], name="batch_tail")

    print("KERNEL_OK")
</pallas_src>

<mosaic_0001>
module attributes {stable_mosaic.version = 11 : i64} {
  func.func @kernel(%arg0: i32, %arg1: i32, %arg2: i32, %arg3: memref<2x8x8xf32, #tpu.memory_space<vmem>>, %arg4: memref<2x8x8xf32, #tpu.memory_space<vmem>>, %arg5: memref<8x32xf32, #tpu.memory_space<vmem>>, %arg6: memref<8x32xf32, #tpu.memory_space<vmem>>, %arg7: memref<1x32xf32, #tpu.memory_space<vmem>>, %arg8: memref<32x32xf32, #tpu.memory_space<vmem>>, %arg9: memref<1x32xf32, #tpu.memory_space<vmem>>, %arg10: memref<32x32xf32, #tpu.memory_space<vmem>>, %arg11: memref<1x32xf32, #tpu.memory_space<vmem>>, %arg12: memref<1x2x32xf32, #tpu.memory_space<vmem>>) attributes {dimension_semantics = [#tpu.dimension_semantics<parallel>, #tpu.dimension_semantics<parallel>, #tpu.dimension_semantics<arbitrary>], iteration_bounds = array<i64: 1, 1, 1>, scalar_prefetch = 0 : i64, scratch_operands = 0 : i64, tpu.core_type = #tpu.core_type<tc>, window_params = [{transform_indices = @transform_0, window_bounds = array<i64: 2, 8, 8>}, {transform_indices = @transform_1, window_bounds = array<i64: 2, 8, 8>}, {pipeline_mode = #tpu.pipeline_mode<synchronous>, transform_indices = @transform_2, window_bounds = array<i64: 8, 32>}, {pipeline_mode = #tpu.pipeline_mode<synchronous>, transform_indices = @transform_3, window_bounds = array<i64: 8, 32>}, {pipeline_mode = #tpu.pipeline_mode<synchronous>, transform_indices = @transform_4, window_bounds = array<i64: 1, 32>}, {pipeline_mode = #tpu.pipeline_mode<synchronous>, transform_indices = @transform_5, window_bounds = array<i64: 32, 32>}, {pipeline_mode = #tpu.pipeline_mode<synchronous>, transform_indices = @transform_6, window_bounds = array<i64: 1, 32>}, {pipeline_mode = #tpu.pipeline_mode<synchronous>, transform_indices = @transform_7, window_bounds = array<i64: 32, 32>}, {pipeline_mode = #tpu.pipeline_mode<synchronous>, transform_indices = @transform_8, window_bounds = array<i64: 1, 32>}, {transform_indices = @transform_9, window_bounds = array<i64: 1, 2, 32>}]} {
    %c0_i32 = arith.constant 0 : i32
    %0 = arith.cmpi eq, %arg2, %c0_i32 : i32
    %1 = arith.extui %0 : i1 to i32
    %c0_i32_0 = arith.constant 0 : i32
    %2 = arith.cmpi ne, %1, %c0_i32_0 : i32
    scf.if %2 {
      %cst_34 = arith.constant 0.000000e+00 : f32
      %38 = vector.broadcast %cst_34 : f32 to vector<1x2x32xf32>
      %c0_35 = arith.constant 0 : index
      %c0_36 = arith.constant 0 : index
      %c0_37 = arith.constant 0 : index
      %39 = vector.load %arg12[%c0_35, %c0_36, %c0_37] : memref<1x2x32xf32, #tpu.memory_space<vmem>>, vector<1x2x32xf32>
      tpu.vector_store %arg12[%c0_35, %c0_36, %c0_37], %38 {strides = array<i32>} : memref<1x2x32xf32, #tpu.memory_space<vmem>>, vector<1x2x32xf32>,
    } else {
    }
    %c0 = arith.constant 0 : index
    %c0_1 = arith.constant 0 : index
    %c0_2 = arith.constant 0 : index
    %3 = vector.load %arg3[%c0, %c0_1, %c0_2] : memref<2x8x8xf32, #tpu.memory_space<vmem>>, vector<2x8x8xf32>
    %4 = vector.shape_cast %3 : vector<2x8x8xf32> to vector<16x8xf32>
    %c0_3 = arith.constant 0 : index
    %c0_4 = arith.constant 0 : index
    %c0_5 = arith.constant 0 : index
    %5 = vector.load %arg4[%c0_3, %c0_4, %c0_5] : memref<2x8x8xf32, #tpu.memory_space<vmem>>, vector<2x8x8xf32>
    %6 = vector.shape_cast %5 : vector<2x8x8xf32> to vector<16x8xf32>
    %c0_6 = arith.constant 0 : index
    %c0_7 = arith.constant 0 : index
    %7 = vector.load %arg5[%c0_6, %c0_7] : memref<8x32xf32, #tpu.memory_space<vmem>>, vector<8x32xf32>
    %c0_8 = arith.constant 0 : index
    %c0_9 = arith.constant 0 : index
    %8 = vector.load %arg6[%c0_8, %c0_9] : memref<8x32xf32, #tpu.memory_space<vmem>>, vector<8x32xf32>
    %c0_10 = arith.constant 0 : index
    %c0_11 = arith.constant 0 : index
    %9 = vector.load %arg7[%c0_10, %c0_11] : memref<1x32xf32, #tpu.memory_space<vmem>>, vector<1x32xf32>
    %cst = arith.constant dense<0.000000e+00> : vector<16x32xf32>
    %10 = tpu.matmul %4, %7, %cst {dimension_numbers = #tpu.dot_dimension_numbers<[1], [0], [0], [1], [0, 0, 1, 1], [], []>} : vector<16x8xf32>, vector<8x32xf32>, vector<16x32xf32> -> vector<16x32xf32>
    %cst_12 = arith.constant dense<0.000000e+00> : vector<16x32xf32>
    %11 = tpu.matmul %6, %8, %cst_12 {dimension_numbers = #tpu.dot_dimension_numbers<[1], [0], [0], [1], [0, 0, 1, 1], [], []>} : vector<16x8xf32>, vector<8x32xf32>, vector<16x32xf32> -> vector<16x32xf32>
    %12 = arith.addf %10, %11 : vector<16x32xf32>
    %13 = vector.broadcast %9 : vector<1x32xf32> to vector<16x32xf32>
    %14 = arith.addf %12, %13 : vector<16x32xf32>
    %cst_13 = arith.constant 0.000000e+00 : f32
    %15 = vector.broadcast %cst_13 : f32 to vector<16x32xf32>
    %16 = arith.maximumf %14, %15 : vector<16x32xf32>
    %c0_14 = arith.constant 0 : index
    %c0_15 = arith.constant 0 : index
    %17 = vector.load %arg8[%c0_14, %c0_15] : memref<32x32xf32, #tpu.memory_space<vmem>>, vector<32x32xf32>
    %c0_16 = arith.constant 0 : index
    %c0_17 = arith.constant 0 : index
    %18 = vector.load %arg9[%c0_16, %c0_17] : memref<1x32xf32, #tpu.memory_space<vmem>>, vector<1x32xf32>
    %cst_18 = arith.constant dense<0.000000e+00> : vector<16x32xf32>
    %19 = tpu.matmul %16, %17, %cst_18 {dimension_numbers = #tpu.dot_dimension_numbers<[1], [0], [0], [1], [0, 0, 1, 1], [], []>} : vector<16x32xf32>, vector<32x32xf32>, vector<16x32xf32> -> vector<16x32xf32>
    %20 = vector.broadcast %18 : vector<1x32xf32> to vector<16x32xf32>
    %21 = arith.addf %19, %20 : vector<16x32xf32>
    %cst_19 = arith.constant 0.000000e+00 : f32
    %22 = vector.broadcast %cst_19 : f32 to vector<16x32xf32>
    %23 = arith.maximumf %21, %22 : vector<16x32xf32>
    %c0_20 = arith.constant 0 : index
    %c0_21 = arith.constant 0 : index
    %24 = vector.load %arg10[%c0_20, %c0_21] : memref<32x32xf32, #tpu.memory_space<vmem>>, vector<32x32xf32>
    %c0_22 = arith.constant 0 : index
    %c0_23 = arith.constant 0 : index
    %25 = vector.load %arg11[%c0_22, %c0_23] : memref<1x32xf32, #tpu.memory_space<vmem>>, vector<1x32xf32>
    %cst_24 = arith.constant dense<0.000000e+00> : vector<16x32xf32>
    %26 = tpu.matmul %23, %24, %cst_24 {dimension_numbers = #tpu.dot_dimension_numbers<[1], [0], [0], [1], [0, 0, 1, 1], [], []>} : vector<16x32xf32>, vector<32x32xf32>, vector<16x32xf32> -> vector<16x32xf32>
    %27 = vector.broadcast %25 : vector<1x32xf32> to vector<16x32xf32>
    %28 = arith.addf %26, %27 : vector<16x32xf32>
    %29 = vector.shape_cast %28 : vector<16x32xf32> to vector<2x8x32xf32>
    %c0_25 = arith.constant 0 : index
    %c0_26 = arith.constant 0 : index
    %c0_27 = arith.constant 0 : index
    %30 = vector.load %arg12[%c0_25, %c0_26, %c0_27] : memref<1x2x32xf32, #tpu.memory_space<vmem>>, vector<1x2x32xf32>
    %cst_28 = arith.constant dense<0.000000e+00> : vector<2x32xf32>
    %31 = vector.multi_reduction <add>, %29, %cst_28 [1] : vector<2x8x32xf32> to vector<2x32xf32>
    %32 = vector.shape_cast %31 : vector<2x32xf32> to vector<1x2x32xf32>
    %33 = arith.addf %30, %32 : vector<1x2x32xf32>
    %c0_29 = arith.constant 0 : index
    %c0_30 = arith.constant 0 : index
    %c0_31 = arith.constant 0 : index
    %34 = vector.load %arg12[%c0_29, %c0_30, %c0_31] : memref<1x2x32xf32, #tpu.memory_space<vmem>>, vector<1x2x32xf32>
    tpu.vector_store %arg12[%c0_29, %c0_30, %c0_31], %33 {strides = array<i32>} : memref<1x2x32xf32, #tpu.memory_space<vmem>>, vector<1x2x32xf32>,
    %c0_i32_32 = arith.constant 0 : i32
    %35 = arith.cmpi eq, %arg2, %c0_i32_32 : i32
    %36 = arith.extui %35 : i1 to i32
    %c0_i32_33 = arith.constant 0 : i32
    %37 = arith.cmpi ne, %36, %c0_i32_33 : i32
    scf.if %37 {
      %c0_34 = arith.constant 0 : index
      %c0_35 = arith.constant 0 : index
      %c0_36 = arith.constant 0 : index
      %38 = vector.load %arg12[%c0_34, %c0_35, %c0_36] : memref<1x2x32xf32, #tpu.memory_space<vmem>>, vector<1x2x32xf32>
      %cst_37 = arith.constant 1.250000e-01 : f32
      %39 = vector.broadcast %cst_37 : f32 to vector<1x2x32xf32>
      %40 = arith.mulf %38, %39 : vector<1x2x32xf32>
      %c0_38 = arith.constant 0 : index
      %c0_39 = arith.constant 0 : index
      %c0_40 = arith.constant 0 : index
      %41 = vector.load %arg12[%c0_38, %c0_39, %c0_40] : memref<1x2x32xf32, #tpu.memory_space<vmem>>, vector<1x2x32xf32>
      tpu.vector_store %arg12[%c0_38, %c0_39, %c0_40], %40 {strides = array<i32>} : memref<1x2x32xf32, #tpu.memory_space<vmem>>, vector<1x2x32xf32>,
    } else {
    }
    return
  }
  func.func @transform_0(%arg0: i32, %arg1: i32, %arg2: i32) -> (i32, i32, i32) {
    %c1_i32 = arith.constant 1 : i32
    %0 = arith.muli %arg0, %c1_i32 : i32
    %1 = arith.addi %0, %arg2 : i32
    %c0_i32 = arith.constant 0 : i32
    %2 = arith.minsi %1, %c0_i32 : i32
    %c0_i32_0 = arith.constant 0 : i32
    %c0_i32_1 = arith.constant 0 : i32
    return %arg1, %2, %c0_i32_0 : i32, i32, i32
  }
  func.func @transform_1(%arg0: i32, %arg1: i32, %arg2: i32) -> (i32, i32, i32) {
    %c1_i32 = arith.constant 1 : i32
    %0 = arith.muli %arg0, %c1_i32 : i32
    %1 = arith.addi %0, %arg2 : i32
    %c0_i32 = arith.constant 0 : i32
    %2 = arith.minsi %1, %c0_i32 : i32
    %c0_i32_0 = arith.constant 0 : i32
    %c0_i32_1 = arith.constant 0 : i32
    return %arg1, %2, %c0_i32_0 : i32, i32, i32
  }
  func.func @transform_2(%arg0: i32, %arg1: i32, %arg2: i32) -> (i32, i32) {
    %c0_i32 = arith.constant 0 : i32
    %c0_i32_0 = arith.constant 0 : i32
    %c0_i32_1 = arith.constant 0 : i32
    return %c0_i32, %c0_i32_0 : i32, i32
  }
  func.func @transform_3(%arg0: i32, %arg1: i32, %arg2: i32) -> (i32, i32) {
    %c0_i32 = arith.constant 0 : i32
    %c0_i32_0 = arith.constant 0 : i32
    %c0_i32_1 = arith.constant 0 : i32
    return %c0_i32, %c0_i32_0 : i32, i32
  }
  func.func @transform_4(%arg0: i32, %arg1: i32, %arg2: i32) -> (i32, i32) {
    %c0_i32 = arith.constant 0 : i32
    %c0_i32_0 = arith.constant 0 : i32
    %c0_i32_1 = arith.constant 0 : i32
    return %c0_i32, %c0_i32_0 : i32, i32
  }
  func.func @transform_5(%arg0: i32, %arg1: i32, %arg2: i32) -> (i32, i32) {
    %c0_i32 = arith.constant 0 : i32
    %c0_i32_0 = arith.constant 0 : i32
    %c0_i32_1 = arith.constant 0 : i32
    return %c0_i32, %c0_i32_0 : i32, i32
  }
  func.func @transform_6(%arg0: i32, %arg1: i32, %arg2: i32) -> (i32, i32) {
    %c0_i32 = arith.constant 0 : i32
    %c0_i32_0 = arith.constant 0 : i32
    %c0_i32_1 = arith.constant 0 : i32
    return %c0_i32, %c0_i32_0 : i32, i32
  }
  func.func @transform_7(%arg0: i32, %arg1: i32, %arg2: i32) -> (i32, i32) {
    %c0_i32 = arith.constant 0 : i32
    %c0_i32_0 = arith.constant 0 : i32
    %c0_i32_1 = arith.constant 0 : i32
    return %c0_i32, %c0_i32_0 : i32, i32
  }
  func.func @transform_8(%arg0: i32, %arg1: i32, %arg2: i32) -> (i32, i32) {
    %c0_i32 = arith.constant 0 : i32
    %c0_i32_0 = arith.constant 0 : i32
    %c0_i32_1 = arith.constant 0 : i32
    return %c0_i32, %c0_i32_0 : i32, i32
  }
  func.func @transform_9(%arg0: i32, %arg1: i32, %arg2: i32) -> (i32, i32, i32) {
    %c0_i32 = arith.constant 0 : i32
    %c0_i32_0 = arith.constant 0 : i32
    return %arg0, %arg1, %c0_i32 : i32, i32, i32
  }
}

module attributes {stable_mosaic.version = 11 : i64} {
  func.func @kernel(%arg0: i32, %arg1: i32, %arg2: i32, %arg3: memref<2x8x8xf32, #tpu.memory_space<vmem>>, %arg4: memref<2x8x8xf32, #tpu.memory_space<vmem>>, %arg5: memref<8x32xf32, #tpu.memory_space<vmem>>, %arg6: memref<8x32xf32, #tpu.memory_space<vmem>>, %arg7: memref<1x32xf32, #tpu.memory_space<vmem>>, %arg8: memref<32x32xf32, #tpu.memory_space<vmem>>, %arg9: memref<1x32xf32, #tpu.memory_space<vmem>>, %arg10: memref<32x32xf32, #tpu.memory_space<vmem>>, %arg11: memref<1x32xf32, #tpu.memory_space<vmem>>, %arg12: memref<1x2x32xf32, #tpu.memory_space<vmem>>) attributes {dimension_semantics = [#tpu.dimension_semantics<parallel>, #tpu.dimension_semantics<parallel>, #tpu.dimension_semantics<arbitrary>], iteration_bounds = array<i64: 1, 1, 1>, scalar_prefetch = 0 : i64, scratch_operands = 0 : i64, tpu.core_type = #tpu.core_type<tc>, window_params = [{transform_indices = @transform_0, window_bounds = array<i64: 2, 8, 8>}, {transform_indices = @transform_1, window_bounds = array<i64: 2, 8, 8>}, {pipeline_mode = #tpu.pipeline_mode<synchronous>, transform_indices = @transform_2, window_bounds = array<i64: 8, 32>}, {pipeline_mode = #tpu.pipeline_mode<synchronous>, transform_indices = @transform_3, window_bounds = array<i64: 8, 32>}, {pipeline_mode = #tpu.pipeline_mode<synchronous>, transform_indices = @transform_4, window_bounds = array<i64: 1, 32>}, {pipeline_mode = #tpu.pipeline_mode<synchronous>, transform_indices = @transform_5, window_bounds = array<i64: 32, 32>}, {pipeline_mode = #tpu.pipeline_mode<synchronous>, transform_indices = @transform_6, window_bounds = array<i64: 1, 32>}, {pipeline_mode = #tpu.pipeline_mode<synchronous>, transform_indices = @transform_7, window_bounds = array<i64: 32, 32>}, {pipeline_mode = #tpu.pipeline_mode<synchronous>, transform_indices = @transform_8, window_bounds = array<i64: 1, 32>}, {transform_indices = @transform_9, window_bounds = array<i64: 1, 2, 32>}]} {
    %c0_i32 = arith.constant 0 : i32
    %0 = arith.cmpi eq, %arg2, %c0_i32 : i32
    %1 = arith.extui %0 : i1 to i32
    %c0_i32_0 = arith.constant 0 : i32
    %2 = arith.cmpi ne, %1, %c0_i32_0 : i32
    scf.if %2 {
      %cst_34 = arith.constant 0.000000e+00 : f32
      %38 = vector.broadcast %cst_34 : f32 to vector<1x2x32xf32>
      %c0_35 = arith.constant 0 : index
      %c0_36 = arith.constant 0 : index
      %c0_37 = arith.constant 0 : index
      %39 = vector.load %arg12[%c0_35, %c0_36, %c0_37] : memref<1x2x32xf32, #tpu.memory_space<vmem>>, vector<1x2x32xf32>
      tpu.vector_store %arg12[%c0_35, %c0_36, %c0_37], %38 {strides = array<i32>} : memref<1x2x32xf32, #tpu.memory_space<vmem>>, vector<1x2x32xf32>,
    } else {
    }
    %c0 = arith.constant 0 : index
    %c0_1 = arith.constant 0 : index
    %c0_2 = arith.constant 0 : index
    %3 = vector.load %arg3[%c0, %c0_1, %c0_2] : memref<2x8x8xf32, #tpu.memory_space<vmem>>, vector<2x8x8xf32>
    %4 = vector.shape_cast %3 : vector<2x8x8xf32> to vector<16x8xf32>
    %c0_3 = arith.constant 0 : index
    %c0_4 = arith.constant 0 : index
    %c0_5 = arith.constant 0 : index
    %5 = vector.load %arg4[%c0_3, %c0_4, %c0_5] : memref<2x8x8xf32, #tpu.memory_space<vmem>>, vector<2x8x8xf32>
    %6 = vector.shape_cast %5 : vector<2x8x8xf32> to vector<16x8xf32>
    %c0_6 = arith.constant 0 : index
    %c0_7 = arith.constant 0 : index
    %7 = vector.load %arg5[%c0_6, %c0_7] : memref<8x32xf32, #tpu.memory_space<vmem>>, vector<8x32xf32>
    %c0_8 = arith.constant 0 : index
    %c0_9 = arith.constant 0 : index
    %8 = vector.load %arg6[%c0_8, %c0_9] : memref<8x32xf32, #tpu.memory_space<vmem>>, vector<8x32xf32>
    %c0_10 = arith.constant 0 : index
    %c0_11 = arith.constant 0 : index
    %9 = vector.load %arg7[%c0_10, %c0_11] : memref<1x32xf32, #tpu.memory_space<vmem>>, vector<1x32xf32>
    %cst = arith.constant dense<0.000000e+00> : vector<16x32xf32>
    %10 = tpu.matmul %4, %7, %cst {dimension_numbers = #tpu.dot_dimension_numbers<[1], [0], [0], [1], [0, 0, 1, 1], [], []>} : vector<16x8xf32>, vector<8x32xf32>, vector<16x32xf32> -> vector<16x32xf32>
    %cst_12 = arith.constant dense<0.000000e+00> : vector<16x32xf32>
    %11 = tpu.matmul %6, %8, %cst_12 {dimension_numbers = #tpu.dot_dimension_numbers<[1], [0], [0], [1], [0, 0, 1, 1], [], []>} : vector<16x8xf32>, vector<8x32xf32>, vector<16x32xf32> -> vector<16x32xf32>
    %12 = arith.addf %10, %11 : vector<16x32xf32>
    %13 = vector.broadcast %9 : vector<1x32xf32> to vector<16x32xf32>
    %14 = arith.addf %12, %13 : vector<16x32xf32>
    %cst_13 = arith.constant 0.000000e+00 : f32
    %15 = vector.broadcast %cst_13 : f32 to vector<16x32xf32>
    %16 = arith.maximumf %14, %15 : vector<16x32xf32>
    %c0_14 = arith.constant 0 : index
    %c0_15 = arith.constant 0 : index
    %17 = vector.load %arg8[%c0_14, %c0_15] : memref<32x32xf32, #tpu.memory_space<vmem>>, vector<32x32xf32>
    %c0_16 = arith.constant 0 : index
    %c0_17 = arith.constant 0 : index
    %18 = vector.load %arg9[%c0_16, %c0_17] : memref<1x32xf32, #tpu.memory_space<vmem>>, vector<1x32xf32>
    %cst_18 = arith.constant dense<0.000000e+00> : vector<16x32xf32>
    %19 = tpu.matmul %16, %17, %cst_18 {dimension_numbers = #tpu.dot_dimension_numbers<[1], [0], [0], [1], [0, 0, 1, 1], [], []>} : vector<16x32xf32>, vector<32x32xf32>, vector<16x32xf32> -> vector<16x32xf32>
    %20 = vector.broadcast %18 : vector<1x32xf32> to vector<16x32xf32>
    %21 = arith.addf %19, %20 : vector<16x32xf32>
    %cst_19 = arith.constant 0.000000e+00 : f32
    %22 = vector.broadcast %cst_19 : f32 to vector<16x32xf32>
    %23 = arith.maximumf %21, %22 : vector<16x32xf32>
    %c0_20 = arith.constant 0 : index
    %c0_21 = arith.constant 0 : index
    %24 = vector.load %arg10[%c0_20, %c0_21] : memref<32x32xf32, #tpu.memory_space<vmem>>, vector<32x32xf32>
    %c0_22 = arith.constant 0 : index
    %c0_23 = arith.constant 0 : index
    %25 = vector.load %arg11[%c0_22, %c0_23] : memref<1x32xf32, #tpu.memory_space<vmem>>, vector<1x32xf32>
    %cst_24 = arith.constant dense<0.000000e+00> : vector<16x32xf32>
    %26 = tpu.matmul %23, %24, %cst_24 {dimension_numbers = #tpu.dot_dimension_numbers<[1], [0], [0], [1], [0, 0, 1, 1], [], []>} : vector<16x32xf32>, vector<32x32xf32>, vector<16x32xf32> -> vector<16x32xf32>
    %27 = vector.broadcast %25 : vector<1x32xf32> to vector<16x32xf32>
    %28 = arith.addf %26, %27 : vector<16x32xf32>
    %29 = vector.shape_cast %28 : vector<16x32xf32> to vector<2x8x32xf32>
    %c0_25 = arith.constant 0 : index
    %c0_26 = arith.constant 0 : index
    %c0_27 = arith.constant 0 : index
    %30 = vector.load %arg12[%c0_25, %c0_26, %c0_27] : memref<1x2x32xf32, #tpu.memory_space<vmem>>, vector<1x2x32xf32>
    %cst_28 = arith.constant dense<0.000000e+00> : vector<2x32xf32>
    %31 = vector.multi_reduction <add>, %29, %cst_28 [1] : vector<2x8x32xf32> to vector<2x32xf32>
    %32 = vector.shape_cast %31 : vector<2x32xf32> to vector<1x2x32xf32>
    %33 = arith.addf %30, %32 : vector<1x2x32xf32>
    %c0_29 = arith.constant 0 : index
    %c0_30 = arith.constant 0 : index
    %c0_31 = arith.constant 0 : index
    %34 = vector.load %arg12[%c0_29, %c0_30, %c0_31] : memref<1x2x32xf32, #tpu.memory_space<vmem>>, vector<1x2x32xf32>
    tpu.vector_store %arg12[%c0_29, %c0_30, %c0_31], %33 {strides = array<i32>} : memref<1x2x32xf32, #tpu.memory_space<vmem>>, vector<1x2x32xf32>,
    %c0_i32_32 = arith.constant 0 : i32
    %35 = arith.cmpi eq, %arg2, %c0_i32_32 : i32
    %36 = arith.extui %35 : i1 to i32
    %c0_i32_33 = arith.constant 0 : i32
    %37 = arith.cmpi ne, %36, %c0_i32_33 : i32
    scf.if %37 {
      %c0_34 = arith.constant 0 : index
      %c0_35 = arith.constant 0 : index
      %c0_36 = arith.constant 0 : index
      %38 = vector.load %arg12[%c0_34, %c0_35, %c0_36] : memref<1x2x32xf32, #tpu.memory_space<vmem>>, vector<1x2x32xf32>
      %cst_37 = arith.constant 1.250000e-01 : f32
      %39 = vector.broadcast %cst_37 : f32 to vector<1x2x32xf32>
      %40 = arith.mulf %38, %39 : vector<1x2x32xf32>
      %c0_38 = arith.constant 0 : index
      %c0_39 = arith.constant 0 : index
      %c0_40 = arith.constant 0 : index
      %41 = vector.load %arg12[%c0_38, %c0_39, %c0_40] : memref<1x2x32xf32, #tpu.memory_space<vmem>>, vector<1x2x32xf32>
      tpu.vector_store %arg12[%c0_38, %c0_39, %c0_40], %40 {strides = array<i32>} : memref<1x2x32xf32, #tpu.memory_space<vmem>>, vector<1x2x32xf32>,
    } else {
    }
    return
  }
  func.func @transform_0(%arg0: i32, %arg1: i32, %arg2: i32) -> (i32, i32, i32) {
    %c1_i32 = arith.constant 1 : i32
    %0 = arith.muli %arg0, %c1_i32 : i32
    %1 = arith.addi %0, %arg2 : i32
    %c0_i32 = arith.constant 0 : i32
    %2 = arith.minsi %1, %c0_i32 : i32
    %c0_i32_0 = arith.constant 0 : i32
    %c0_i32_1 = arith.constant 0 : i32
    return %arg1, %2, %c0_i32_0 : i32, i32, i32
  }
  func.func @transform_1(%arg0: i32, %arg1: i32, %arg2: i32) -> (i32, i32, i32) {
    %c1_i32 = arith.constant 1 : i32
    %0 = arith.muli %arg0, %c1_i32 : i32
    %1 = arith.addi %0, %arg2 : i32
    %c0_i32 = arith.constant 0 : i32
    %2 = arith.minsi %1, %c0_i32 : i32
    %c0_i32_0 = arith.constant 0 : i32
    %c0_i32_1 = arith.constant 0 : i32
    return %arg1, %2, %c0_i32_0 : i32, i32, i32
  }
  func.func @transform_2(%arg0: i32, %arg1: i32, %arg2: i32) -> (i32, i32) {
    %c0_i32 = arith.constant 0 : i32
    %c0_i32_0 = arith.constant 0 : i32
    %c0_i32_1 = arith.constant 0 : i32
    return %c0_i32, %c0_i32_0 : i32, i32
  }
  func.func @transform_3(%arg0: i32, %arg1: i32, %arg2: i32) -> (i32, i32) {
    %c0_i32 = arith.constant 0 : i32
    %c0_i32_0 = arith.constant 0 : i32
    %c0_i32_1 = arith.constant 0 : i32
    return %c0_i32, %c0_i32_0 : i32, i32
  }
  func.func @transform_4(%arg0: i32, %arg1: i32, %arg2: i32) -> (i32, i32) {
    %c0_i32 = arith.constant 0 : i32
    %c0_i32_0 = arith.constant 0 : i32
    %c0_i32_1 = arith.constant 0 : i32
    return %c0_i32, %c0_i32_0 : i32, i32
  }
  func.func @transform_5(%arg0: i32, %arg1: i32, %arg2: i32) -> (i32, i32) {
    %c0_i32 = arith.constant 0 : i32
    %c0_i32_0 = arith.constant 0 : i32
    %c0_i32_1 = arith.constant 0 : i32
    return %c0_i32, %c0_i32_0 : i32, i32
  }
  func.func @transform_6(%arg0: i32, %arg1: i32, %arg2: i32) -> (i32, i32) {
    %c0_i32 = arith.constant 0 : i32
    %c0_i32_0 = arith.constant 0 : i32
    %c0_i32_1 = arith.constant 0 : i32
    return %c0_i32, %c0_i32_0 : i32, i32
  }
  func.func @transform_7(%arg0: i32, %arg1: i32, %arg2: i32) -> (i32, i32) {
    %c0_i32 = arith.constant 0 : i32
    %c0_i32_0 = arith.constant 0 : i32
    %c0_i32_1 = arith.constant 0 : i32
    return %c0_i32, %c0_i32_0 : i32, i32
  }
  func.func @transform_8(%arg0: i32, %arg1: i32, %arg2: i32) -> (i32, i32) {
    %c0_i32 = arith.constant 0 : i32
    %c0_i32_0 = arith.constant 0 : i32
    %c0_i32_1 = arith.constant 0 : i32
    return %c0_i32, %c0_i32_0 : i32, i32
  }
  func.func @transform_9(%arg0: i32, %arg1: i32, %arg2: i32) -> (i32, i32, i32) {
    %c0_i32 = arith.constant 0 : i32
    %c0_i32_0 = arith.constant 0 : i32
    return %arg0, %arg1, %c0_i32 : i32, i32, i32
  }
}

</mosaic_0001>

<bundles_post_ra>
// kernel: tpu_custom_call.1
= control target key start
LH: loop header
LB: loop body
LE: loop exit
PB: predicated region body
PF: predicated region fallthrough
CT: control target
= control target key end

     0   :  { %14 = vsyncpa [#allocation3], 0  ;;  %s658_s0 = inlined_call_operand.hbm [shape: f32[2,8,8], index: 0, kind: input, shape index: {}]   ;;  %s659_s1 = inlined_call_operand.hbm [shape: f32[2,8,8], index: 1, kind: input, shape index: {}]   ;;  %s660_s2 = inlined_call_operand.hbm [shape: f32[8,32], index: 2, kind: input, shape index: {}]   ;;  %s661_s3 = inlined_call_operand.hbm [shape: f32[8,32], index: 3, kind: input, shape index: {}]   ;;  %s662_s4 = inlined_call_operand.vmem [shape: f32[1,32], index: 4, kind: input, shape index: {}]   ;;  %s663_s5 = inlined_call_operand.hbm [shape: f32[32,32], index: 5, kind: input, shape index: {}]   ;;  %s664_s6 = inlined_call_operand.vmem [shape: f32[1,32], index: 6, kind: input, shape index: {}]   ;;  %s665_s7 = inlined_call_operand.hbm [shape: f32[32,32], index: 7, kind: input, shape index: {}]   ;;  %s666_s8 = inlined_call_operand.vmem [shape: f32[1,32], index: 8, kind: input, shape index: {}]   ;;  %s667_s9 = inlined_call_operand.hbm [shape: f32[1,2,32], index: 9, kind: output, shape index: {}]  }
   0x1   :  { %15 = vsyncpa [#allocation6], 0 }
   0x2   :  { %16 = vsyncpa [#allocation9], 0 }
   0x3   :  { %17 = vsyncpa [#allocation12], 0 }
   0x4   :  { %18 = vsyncpa [#allocation4], 0  ;;  %s46_s11 = sshll.u32 %s659_s1, 4  ;;  %s547_s12 = smov [#allocation5]   ;;  %s47_s11 = int_to_ptr.hbm [resolvable:$true] %s46_s11 }
   0x5   :  { %s48_s13 = sshll.u32 %s547_s12, 4  ;;  %s71_s16 = sshll.u32 %s661_s3, 4  ;;  %s49_s13 = int_to_ptr.vmem [resolvable:$true] %s48_s13  ;;  %s72_s16 = int_to_ptr.hbm [resolvable:$true] %s71_s16 }
   0x6   :  { %s548_s17 = smov 128   ;;  %s549_s18 = smov 8  }
   0x7   :  { %54 = dma.hbm_to_vmem [thread:$0]  %s47_s11, 256, %s49_s13, [#allocation6], %s548_s17, %s548_s17, %s549_s18  }
   0x8   :  { %s550_s19 = smov [#allocation8]   ;;  %s28_s1 = sshll.u32 %s658_s0, 4  ;;  %s29_s1 = int_to_ptr.hbm [resolvable:$true] %s28_s1 }
   0x9   :  { %s73_s20 = sshll.u32 %s550_s19, 4  ;;  %s60_s3 = sshll.u32 %s660_s2, 4  ;;  %s74_s20 = int_to_ptr.vmem [resolvable:$true] %s73_s20  ;;  %s61_s3 = int_to_ptr.hbm [resolvable:$true] %s60_s3 }
   0xa   :  { %76 = dma.hbm_to_vmem [thread:$0]  %s72_s16, 128, %s74_s20, [#allocation9]  }
   0xb   :  { %s551_s25 = smov [#allocation2]   ;;  %s552_s27 = smov [#allocation7]  }
   0xc   :  { %s30_s26 = sshll.u32 %s551_s25, 4  ;;  %s62_s28 = sshll.u32 %s552_s27, 4  ;;  %s31_s26 = int_to_ptr.vmem [resolvable:$true] %s30_s26  ;;  %s63_s28 = int_to_ptr.vmem [resolvable:$true] %s62_s28 }
   0xd   :  { %36 = dma.hbm_to_vmem [thread:$0]  %s29_s1, 256, %s31_s26, [#allocation3], %s548_s17, %s548_s17, %s549_s18  }
   0xe   :  { %s83_s0 = sshll.u32 %s663_s5, 4  ;;  %s98_s2 = sshll.u32 %s665_s7, 4  ;;  %s84_s0 = int_to_ptr.hbm [resolvable:$true] %s83_s0  ;;  %s99_s2 = int_to_ptr.hbm [resolvable:$true] %s98_s2 }
   0xf   :  { %65 = dma.hbm_to_vmem [thread:$0]  %s61_s3, 128, %s63_s28, [#allocation6]  }
  0x10   :  { %s553_s12 = smov [#allocation10]   ;;  %s554_s14 = smov [#allocation11]  }
  0x11   :  { %s85_s13 = sshll.u32 %s553_s12, 4  ;;  %s100_s15 = sshll.u32 %s554_s14, 4  ;;  %s86_s13 = int_to_ptr.vmem [resolvable:$true] %s85_s13  ;;  %s101_s15 = int_to_ptr.vmem [resolvable:$true] %s100_s15 }
  0x12   :  { %91 = dma.hbm_to_vmem [thread:$0]  %s84_s0, 512, %s86_s13, [#allocation9], %s548_s17, %s548_s17, %s549_s18  }
  0x13   :  { %106 = dma.hbm_to_vmem [thread:$0]  %s99_s2, 512, %s101_s15, [#allocation12], %s548_s17, %s548_s17, %s549_s18  }
  0x14   :  { %537 = dma.done.wait [#allocation3], 256  }
  0x15   :  { %538 = vsyncadd [#allocation3], 4294967040 }
  0x16   :  { %539 = dma.done.wait [#allocation6], 384  }
  0x17   :  { %540 = vsyncadd [#allocation6], 4294966912 }
  0x18   :  { %541 = dma.done.wait [#allocation9], 640  }
  0x19   :  { %542 = vsyncadd [#allocation9], 4294966656 }
  0x1a   :  { %543 = dma.done.wait [#allocation12], 512  }
  0x1b   :  { %544 = vsyncadd [#allocation12], 4294966784  ;;  %vm152_vm0 = vcmask 64512   ;;  %v150_v0 = vld [vmem:[#allocation8] sm:$0xff]  ;;  %v149_v1 = vld [vmem:[#allocation7] sm:$0xff]  ;;  %vm226_vm1 = vcmask 261120  }
  0x1c   :  { %v147_v2 = vld [vmem:[#allocation5] sm:$0xff]  ;;  %174 = vmatpush.msra.mxu0 %v150_v0  ;;  %203 = vmatpush.msra.mxu1 %v149_v1  ;;  %v145_v3 = vld [vmem:[#allocation2] sm:$0xff]  ;;  %v148_v4 = vld [vmem:[#allocation5 + $0x8] sm:$0xff]  ;;  %vm143_vm2 = vcmask 254976   ;;  %v555_v32 = vmov 0.0   ;;  %vm312_vm3 = vcmask 1041409  }
  0x1d   :  { %348 = vmatmul.msk.f32.vlgmr.msra.gmra.mxu0 %vm152_vm0, %v147_v2  ;;  %350 = vmatmul.msk.f32.vlgmr.msra.gmra.mxu1 %vm152_vm0, %v145_v3  ;;  %v146_v5 = vld [vmem:[#allocation2 + $0x8] sm:$0xff]  ;;  %v220_v7 = vld [vmem:[#allocation10 + $0x10] sm:$0xff]  ;;  %v219_v8 = vld [vmem:[#allocation10 + $0x8] sm:$0xff]  ;;  %144 = vst.msk [vmem:[#allocation13] sm:$0x3] %vm143_vm2, %v555_v32  ;;  %s331_s21 = sshll.u32 %s667_s9, 4  ;;  %s332_s21 = int_to_ptr.hbm [resolvable:$true] %s331_s21 }
  0x1e   :  { %v221_v6 = vld [vmem:[#allocation10 + $0x18] sm:$0xff]  ;;  %v218_v9 = vld [vmem:[#allocation10] sm:$0xff]  ;;  %v366_v11 = vld [vmem:[%s662_s4] ss:$0 sm:$0xff] }
  0x1f   :  { %245 = vmatpush.msra.mxu2 %v221_v6  ;;  %v261_v10 = vld [vmem:[#allocation11 + $0x18] sm:$0xff]  ;;  %v260_v22 = vld [vmem:[#allocation11 + $0x10] sm:$0xff]  ;;  %v259_v23 = vld [vmem:[#allocation11 + $0x8] sm:$0xff] }
  0x20   :  { %284 = vmatpush.msra.mxu3 %v261_v10  ;;  %v258_v24 = vld [vmem:[#allocation11] sm:$0xff]  ;;  %v367_v25 = vld [vmem:[%s664_s6] ss:$0 sm:$0xff]  ;;  %s556_s6 = smov [#allocation13]  }
  0x21   :  { %246 = vmatpush.msra.mxu2 %v220_v7  ;;  %v368_v33 = vld [vmem:[%s666_s8] ss:$0 sm:$0xff]  ;;  %s329_s8 = sshll.u32 %s556_s6, 4  ;;  %s330_s8 = int_to_ptr.vmem [resolvable:$true] %s329_s8 }
  0x22   :  { %285 = vmatpush.msra.mxu3 %v260_v22 }
  0x23   :  { %247 = vmatpush.msra.mxu2 %v219_v8 }
  0x24   :  { %286 = vmatpush.msra.mxu3 %v259_v23  ;;  %v295_v52 = vld [vmem:[#allocation13] sm:$0x3] }
  0x25   :  { %349 = vmatmul.msk.f32.gmra.mxu0 %vm152_vm0, %v148_v4  ;;  %351 = vmatmul.msk.f32.gmra.mxu1 %vm152_vm0, %v146_v5 }
  0x26   :  { %248 = vmatpush.msra.mxu2 %v218_v9  ;;  %287 = vmatpush.msra.mxu3 %v258_v24 }
  0x9a   :  { %v176_v12 = vpop.f32.mrf.mxu0  ;;  %v205_v13 = vpop.f32.mrf.mxu1 }
  0x9b   :  { %v206_v14 = vadd.f32 %v205_v13, %v176_v12 }
  0x9d   :  { %v214_v15 = vadd.f32 %v366_v11, %v206_v14 }
  0x9f   :  { %v216_v16 = vmax.f32 %v214_v15, 0.0 }
  0xa1   :  { %352 = vmatmul.msk.f32.vlgmr.msra.gmra.mxu2 %vm226_vm1, %v216_v16 }
  0xa2   :  { %v179_v17 = vpop.f32.mrf.mxu0  ;;  %v208_v18 = vpop.f32.mrf.mxu1 }
  0xa3   :  { %v209_v19 = vadd.f32 %v208_v18, %v179_v17 }
  0xa5   :  { %v215_v20 = vadd.f32 %v366_v11, %v209_v19 }
  0xa7   :  { %v217_v21 = vmax.f32 %v215_v20, 0.0 }
  0xa9   :  { %353 = vmatmul.msk.f32.gmra.mxu2 %vm226_vm1, %v217_v21 }
 0x124   :  { %v250_v26 = vpop.f32.mrf.mxu2 }
 0x125   :  { %v251_v27 = vadd.f32 %v367_v25, %v250_v26 }
 0x127   :  { %v256_v28 = vmax.f32 %v251_v27, 0.0 }
 0x129   :  { %354 = vmatmul.msk.f32.vlgmr.msra.gmra.mxu3 %vm226_vm1, %v256_v28 }
 0x12c   :  { %v253_v29 = vpop.f32.mrf.mxu2 }
 0x12d   :  { %v254_v30 = vadd.f32 %v367_v25, %v253_v29 }
 0x12f   :  { %v257_v31 = vmax.f32 %v254_v30, 0.0 }
 0x131   :  { %355 = vmatmul.msk.f32.gmra.mxu3 %vm226_vm1, %v257_v31 }
 0x1ac   :  { %v289_v34 = vpop.f32.mrf.mxu3 }
 0x1ad   :  { %v290_v35 = vadd.f32 %v368_v33, %v289_v34 }
 0x1af   :  { %v296_v36 = vsel %vm226_vm1, %v290_v35, 0.0 }
 0x1b0   :  { %v297_v37 = vrot.slane %v296_v36, 4 }
 0x1b2   :  { %v298_v38 = vadd.f32 %v297_v37, %v296_v36 }
 0x1b4   :  { %v292_v39 = vpop.f32.mrf.mxu3  ;;  %v299_v41 = vrot.slane %v298_v38, 2 }
 0x1b5   :  { %v293_v40 = vadd.f32 %v368_v33, %v292_v39 }
 0x1b6   :  { %v300_v44 = vadd.f32 %v299_v41, %v298_v38 }
 0x1b7   :  { %v303_v42 = vsel %vm226_vm1, %v293_v40, 0.0 }
 0x1b8   :  { %v304_v43 = vrot.slane %v303_v42, 4  ;;  %v301_v47 = vrot.slane %v300_v44, 1 }
 0x1ba   :  { %v305_v45 = vadd.f32 %v304_v43, %v303_v42  ;;  %v302_v50 = vadd.f32 %v301_v47, %v300_v44 }
 0x1bc   :  { %v306_v46 = vrot.slane %v305_v45, 2 }
 0x1be   :  { %v307_v48 = vadd.f32 %v306_v46, %v305_v45 }
 0x1c0   :  { %v308_v49 = vrot.slane %v307_v48, 1 }
 0x1c2   :  { %v309_v51 = vadd.f32 %v308_v49, %v307_v48 }
 0x1c4   :  { %v313_v53 = vsel %vm312_vm3, %v309_v51, %v302_v50 }
 0x1c5   :  { %v315_v54 = vadd.f32 %v313_v53, %v295_v52 }
 0x1c7   :  { %317 = vst.msk [vmem:[#allocation13] sm:$0x3] %vm143_vm2, %v315_v54 }
 0x1ce   :  { %v321_v55 = vld [vmem:[#allocation13] sm:$0x3] }
 0x1cf   :  { %v322_v56 = vmul.f32 0.125, %v321_v55 }
 0x1d1   :  { %323 = vst.msk [vmem:[#allocation13] sm:$0x3] %vm143_vm2, %v322_v56 }
 0x1d2   :  { %334 = dma.vmem_to_hbm [thread:$0]  %s330_s8, 32, %s332_s21, [#allocation4]  }
 0x1d3   :  { %545 = dma.done.wait [#allocation4], 32  }
 0x1d4   :  { %546 = vsyncadd [#allocation4], 4294967264 }
 0x1d5   :  { %339 = vsyncpa [#allocation3], 1 }
 0x1d6   :  { %340 = vsyncpa [#allocation6], 1 }
 0x1d7   :  { %341 = vsyncpa [#allocation9], 1 }
 0x1d8   :  { %342 = vsyncpa [#allocation12], 1 }
 0x1d9   :  { %343 = vsyncpa [#allocation4], 1 }

// kernel: tpu_custom_call.1
= control target key start
LH: loop header
LB: loop body
LE: loop exit
PB: predicated region body
PF: predicated region fallthrough
CT: control target
= control target key end

     0   :  { %14 = vsyncpa [#allocation3], 0  ;;  %s658_s0 = inlined_call_operand.hbm [shape: f32[2,8,8], index: 0, kind: input, shape index: {}]   ;;  %s659_s1 = inlined_call_operand.hbm [shape: f32[2,8,8], index: 1, kind: input, shape index: {}]   ;;  %s660_s2 = inlined_call_operand.hbm [shape: f32[8,32], index: 2, kind: input, shape index: {}]   ;;  %s661_s3 = inlined_call_operand.hbm [shape: f32[8,32], index: 3, kind: input, shape index: {}]   ;;  %s662_s4 = inlined_call_operand.vmem [shape: f32[1,32], index: 4, kind: input, shape index: {}]   ;;  %s663_s5 = inlined_call_operand.hbm [shape: f32[32,32], index: 5, kind: input, shape index: {}]   ;;  %s664_s6 = inlined_call_operand.vmem [shape: f32[1,32], index: 6, kind: input, shape index: {}]   ;;  %s665_s7 = inlined_call_operand.hbm [shape: f32[32,32], index: 7, kind: input, shape index: {}]   ;;  %s666_s8 = inlined_call_operand.vmem [shape: f32[1,32], index: 8, kind: input, shape index: {}]   ;;  %s667_s9 = inlined_call_operand.hbm [shape: f32[1,2,32], index: 9, kind: output, shape index: {}]  }
   0x1   :  { %15 = vsyncpa [#allocation6], 0 }
   0x2   :  { %16 = vsyncpa [#allocation9], 0 }
   0x3   :  { %17 = vsyncpa [#allocation12], 0 }
   0x4   :  { %18 = vsyncpa [#allocation4], 0  ;;  %s46_s11 = sshll.u32 %s659_s1, 4  ;;  %s547_s12 = smov [#allocation5]   ;;  %s47_s11 = int_to_ptr.hbm [resolvable:$true] %s46_s11 }
   0x5   :  { %s48_s13 = sshll.u32 %s547_s12, 4  ;;  %s71_s16 = sshll.u32 %s661_s3, 4  ;;  %s49_s13 = int_to_ptr.vmem [resolvable:$true] %s48_s13  ;;  %s72_s16 = int_to_ptr.hbm [resolvable:$true] %s71_s16 }
   0x6   :  { %s548_s17 = smov 128   ;;  %s549_s18 = smov 8  }
   0x7   :  { %54 = dma.hbm_to_vmem [thread:$0]  %s47_s11, 256, %s49_s13, [#allocation6], %s548_s17, %s548_s17, %s549_s18  }
   0x8   :  { %s550_s19 = smov [#allocation8]   ;;  %s28_s1 = sshll.u32 %s658_s0, 4  ;;  %s29_s1 = int_to_ptr.hbm [resolvable:$true] %s28_s1 }
   0x9   :  { %s73_s20 = sshll.u32 %s550_s19, 4  ;;  %s60_s3 = sshll.u32 %s660_s2, 4  ;;  %s74_s20 = int_to_ptr.vmem [resolvable:$true] %s73_s20  ;;  %s61_s3 = int_to_ptr.hbm [resolvable:$true] %s60_s3 }
   0xa   :  { %76 = dma.hbm_to_vmem [thread:$0]  %s72_s16, 128, %s74_s20, [#allocation9]  }
   0xb   :  { %s551_s25 = smov [#allocation2]   ;;  %s552_s27 = smov [#allocation7]  }
   0xc   :  { %s30_s26 = sshll.u32 %s551_s25, 4  ;;  %s62_s28 = sshll.u32 %s552_s27, 4  ;;  %s31_s26 = int_to_ptr.vmem [resolvable:$true] %s30_s26  ;;  %s63_s28 = int_to_ptr.vmem [resolvable:$true] %s62_s28 }
   0xd   :  { %36 = dma.hbm_to_vmem [thread:$0]  %s29_s1, 256, %s31_s26, [#allocation3], %s548_s17, %s548_s17, %s549_s18  }
   0xe   :  { %s83_s0 = sshll.u32 %s663_s5, 4  ;;  %s98_s2 = sshll.u32 %s665_s7, 4  ;;  %s84_s0 = int_to_ptr.hbm [resolvable:$true] %s83_s0  ;;  %s99_s2 = int_to_ptr.hbm [resolvable:$true] %s98_s2 }
   0xf   :  { %65 = dma.hbm_to_vmem [thread:$0]  %s61_s3, 128, %s63_s28, [#allocation6]  }
  0x10   :  { %s553_s12 = smov [#allocation10]   ;;  %s554_s14 = smov [#allocation11]  }
  0x11   :  { %s85_s13 = sshll.u32 %s553_s12, 4  ;;  %s100_s15 = sshll.u32 %s554_s14, 4  ;;  %s86_s13 = int_to_ptr.vmem [resolvable:$true] %s85_s13  ;;  %s101_s15 = int_to_ptr.vmem [resolvable:$true] %s100_s15 }
  0x12   :  { %91 = dma.hbm_to_vmem [thread:$0]  %s84_s0, 512, %s86_s13, [#allocation9], %s548_s17, %s548_s17, %s549_s18  }
  0x13   :  { %106 = dma.hbm_to_vmem [thread:$0]  %s99_s2, 512, %s101_s15, [#allocation12], %s548_s17, %s548_s17, %s549_s18  }
  0x14   :  { %537 = dma.done.wait [#allocation3], 256  }
  0x15   :  { %538 = vsyncadd [#allocation3], 4294967040 }
  0x16   :  { %539 = dma.done.wait [#allocation6], 384  }
  0x17   :  { %540 = vsyncadd [#allocation6], 4294966912 }
  0x18   :  { %541 = dma.done.wait [#allocation9], 640  }
  0x19   :  { %542 = vsyncadd [#allocation9], 4294966656 }
  0x1a   :  { %543 = dma.done.wait [#allocation12], 512  }
  0x1b   :  { %544 = vsyncadd [#allocation12], 4294966784  ;;  %vm152_vm0 = vcmask 64512   ;;  %v150_v0 = vld [vmem:[#allocation8] sm:$0xff]  ;;  %v149_v1 = vld [vmem:[#allocation7] sm:$0xff]  ;;  %vm226_vm1 = vcmask 261120  }
  0x1c   :  { %v147_v2 = vld [vmem:[#allocation5] sm:$0xff]  ;;  %174 = vmatpush.msra.mxu0 %v150_v0  ;;  %203 = vmatpush.msra.mxu1 %v149_v1  ;;  %v145_v3 = vld [vmem:[#allocation2] sm:$0xff]  ;;  %v148_v4 = vld [vmem:[#allocation5 + $0x8] sm:$0xff]  ;;  %vm143_vm2 = vcmask 254976   ;;  %v555_v32 = vmov 0.0   ;;  %vm312_vm3 = vcmask 1041409  }
  0x1d   :  { %348 = vmatmul.msk.f32.vlgmr.msra.gmra.mxu0 %vm152_vm0, %v147_v2  ;;  %350 = vmatmul.msk.f32.vlgmr.msra.gmra.mxu1 %vm152_vm0, %v145_v3  ;;  %v146_v5 = vld [vmem:[#allocation2 + $0x8] sm:$0xff]  ;;  %v220_v7 = vld [vmem:[#allocation10 + $0x10] sm:$0xff]  ;;  %v219_v8 = vld [vmem:[#allocation10 + $0x8] sm:$0xff]  ;;  %144 = vst.msk [vmem:[#allocation13] sm:$0x3] %vm143_vm2, %v555_v32  ;;  %s331_s21 = sshll.u32 %s667_s9, 4  ;;  %s332_s21 = int_to_ptr.hbm [resolvable:$true] %s331_s21 }
  0x1e   :  { %v221_v6 = vld [vmem:[#allocation10 + $0x18] sm:$0xff]  ;;  %v218_v9 = vld [vmem:[#allocation10] sm:$0xff]  ;;  %v366_v11 = vld [vmem:[%s662_s4] ss:$0 sm:$0xff] }
  0x1f   :  { %245 = vmatpush.msra.mxu2 %v221_v6  ;;  %v261_v10 = vld [vmem:[#allocation11 + $0x18] sm:$0xff]  ;;  %v260_v22 = vld [vmem:[#allocation11 + $0x10] sm:$0xff]  ;;  %v259_v23 = vld [vmem:[#allocation11 + $0x8] sm:$0xff] }
  0x20   :  { %284 = vmatpush.msra.mxu3 %v261_v10  ;;  %v258_v24 = vld [vmem:[#allocation11] sm:$0xff]  ;;  %v367_v25 = vld [vmem:[%s664_s6] ss:$0 sm:$0xff]  ;;  %s556_s6 = smov [#allocation13]  }
  0x21   :  { %246 = vmatpush.msra.mxu2 %v220_v7  ;;  %v368_v33 = vld [vmem:[%s666_s8] ss:$0 sm:$0xff]  ;;  %s329_s8 = sshll.u32 %s556_s6, 4  ;;  %s330_s8 = int_to_ptr.vmem [resolvable:$true] %s329_s8 }
  0x22   :  { %285 = vmatpush.msra.mxu3 %v260_v22 }
  0x23   :  { %247 = vmatpush.msra.mxu2 %v219_v8 }
  0x24   :  { %286 = vmatpush.msra.mxu3 %v259_v23  ;;  %v295_v52 = vld [vmem:[#allocation13] sm:$0x3] }
  0x25   :  { %349 = vmatmul.msk.f32.gmra.mxu0 %vm152_vm0, %v148_v4  ;;  %351 = vmatmul.msk.f32.gmra.mxu1 %vm152_vm0, %v146_v5 }
  0x26   :  { %248 = vmatpush.msra.mxu2 %v218_v9  ;;  %287 = vmatpush.msra.mxu3 %v258_v24 }
  0x9a   :  { %v176_v12 = vpop.f32.mrf.mxu0  ;;  %v205_v13 = vpop.f32.mrf.mxu1 }
  0x9b   :  { %v206_v14 = vadd.f32 %v205_v13, %v176_v12 }
  0x9d   :  { %v214_v15 = vadd.f32 %v366_v11, %v206_v14 }
  0x9f   :  { %v216_v16 = vmax.f32 %v214_v15, 0.0 }
  0xa1   :  { %352 = vmatmul.msk.f32.vlgmr.msra.gmra.mxu2 %vm226_vm1, %v216_v16 }
  0xa2   :  { %v179_v17 = vpop.f32.mrf.mxu0  ;;  %v208_v18 = vpop.f32.mrf.mxu1 }
  0xa3   :  { %v209_v19 = vadd.f32 %v208_v18, %v179_v17 }
  0xa5   :  { %v215_v20 = vadd.f32 %v366_v11, %v209_v19 }
  0xa7   :  { %v217_v21 = vmax.f32 %v215_v20, 0.0 }
  0xa9   :  { %353 = vmatmul.msk.f32.gmra.mxu2 %vm226_vm1, %v217_v21 }
 0x124   :  { %v250_v26 = vpop.f32.mrf.mxu2 }
 0x125   :  { %v251_v27 = vadd.f32 %v367_v25, %v250_v26 }
 0x127   :  { %v256_v28 = vmax.f32 %v251_v27, 0.0 }
 0x129   :  { %354 = vmatmul.msk.f32.vlgmr.msra.gmra.mxu3 %vm226_vm1, %v256_v28 }
 0x12c   :  { %v253_v29 = vpop.f32.mrf.mxu2 }
 0x12d   :  { %v254_v30 = vadd.f32 %v367_v25, %v253_v29 }
 0x12f   :  { %v257_v31 = vmax.f32 %v254_v30, 0.0 }
 0x131   :  { %355 = vmatmul.msk.f32.gmra.mxu3 %vm226_vm1, %v257_v31 }
 0x1ac   :  { %v289_v34 = vpop.f32.mrf.mxu3 }
 0x1ad   :  { %v290_v35 = vadd.f32 %v368_v33, %v289_v34 }
 0x1af   :  { %v296_v36 = vsel %vm226_vm1, %v290_v35, 0.0 }
 0x1b0   :  { %v297_v37 = vrot.slane %v296_v36, 4 }
 0x1b2   :  { %v298_v38 = vadd.f32 %v297_v37, %v296_v36 }
 0x1b4   :  { %v292_v39 = vpop.f32.mrf.mxu3  ;;  %v299_v41 = vrot.slane %v298_v38, 2 }
 0x1b5   :  { %v293_v40 = vadd.f32 %v368_v33, %v292_v39 }
 0x1b6   :  { %v300_v44 = vadd.f32 %v299_v41, %v298_v38 }
 0x1b7   :  { %v303_v42 = vsel %vm226_vm1, %v293_v40, 0.0 }
 0x1b8   :  { %v304_v43 = vrot.slane %v303_v42, 4  ;;  %v301_v47 = vrot.slane %v300_v44, 1 }
 0x1ba   :  { %v305_v45 = vadd.f32 %v304_v43, %v303_v42  ;;  %v302_v50 = vadd.f32 %v301_v47, %v300_v44 }
 0x1bc   :  { %v306_v46 = vrot.slane %v305_v45, 2 }
 0x1be   :  { %v307_v48 = vadd.f32 %v306_v46, %v305_v45 }
 0x1c0   :  { %v308_v49 = vrot.slane %v307_v48, 1 }
 0x1c2   :  { %v309_v51 = vadd.f32 %v308_v49, %v307_v48 }
 0x1c4   :  { %v313_v53 = vsel %vm312_vm3, %v309_v51, %v302_v50 }
 0x1c5   :  { %v315_v54 = vadd.f32 %v313_v53, %v295_v52 }
 0x1c7   :  { %317 = vst.msk [vmem:[#allocation13] sm:$0x3] %vm143_vm2, %v315_v54 }
 0x1ce   :  { %v321_v55 = vld [vmem:[#allocation13] sm:$0x3] }
 0x1cf   :  { %v322_v56 = vmul.f32 0.125, %v321_v55 }
 0x1d1   :  { %323 = vst.msk [vmem:[#allocation13] sm:$0x3] %vm143_vm2, %v322_v56 }
 0x1d2   :  { %334 = dma.vmem_to_hbm [thread:$0]  %s330_s8, 32, %s332_s21, [#allocation4]  }
 0x1d3   :  { %545 = dma.done.wait [#allocation4], 32  }
 0x1d4   :  { %546 = vsyncadd [#allocation4], 4294967264 }
 0x1d5   :  { %339 = vsyncpa [#allocation3], 1 }
 0x1d6   :  { %340 = vsyncpa [#allocation6], 1 }
 0x1d7   :  { %341 = vsyncpa [#allocation9], 1 }
 0x1d8   :  { %342 = vsyncpa [#allocation12], 1 }
 0x1d9   :  { %343 = vsyncpa [#allocation4], 1 }

</bundles_post_ra>
